<compile_context>
chip_gen: v7x
topology: tpu7x:2x2x1
jax: 0.10.0
libtpu: 0.0.40
codegen_flags: <defaults>
</compile_context>

<pallas_src>
import jax
import jax.numpy as jnp
from jax import lax
from jax.experimental import pallas as pl
from jax.experimental.pallas import tpu as pltpu
import numpy as np


def lstm_kernel(x_ref, len_ref, wih_ref, whh_ref, b_ref, c_out_ref):
    B = len_ref.shape[0]
    TB, I = x_ref.shape
    T = TB // B
    H = whh_ref.shape[0]

    # Hoisted input projection: tanh(embed) @ W_ih + bias for all timesteps in
    # one MXU call; bias folded here so there is no per-step broadcast.
    xw = (
        jnp.dot(jnp.tanh(x_ref[...]), wih_ref[...],
                preferred_element_type=jnp.float32)
        + b_ref[...]
    )                                               # (T*B, 4H)

    whh = whh_ref[...]                              # (H, 4H)
    lens = len_ref[...]                             # (B, 1) int32

    # h / c live in vregs as loop-carried values (no VMEM scratch traffic).
    h = jnp.zeros((B, H), jnp.float32)
    c = jnp.zeros((B, H), jnp.float32)

    # T is static and small -> fully unrolled recurrence (LLO can overlap the
    # MXU pop of step t with the VPU/EUP tail of step t-1).
    for t in range(T):
        gates = xw[t * B:(t + 1) * B, :] + jnp.dot(
            h, whh, preferred_element_type=jnp.float32)      # (B, 4H)

        # Full-width activations on the 4H=128 lane vreg, then 32-lane views.
        sig = jax.nn.sigmoid(gates)
        th = jnp.tanh(gates)
        i_g = sig[:, 0 * H:1 * H]
        f_g = sig[:, 1 * H:2 * H]
        g_g = th[:, 2 * H:3 * H]
        o_g = sig[:, 3 * H:4 * H]

        c_new = f_g * c + i_g * g_g
        h_new = o_g * jnp.tanh(c_new)

        # pack_padded_sequence semantics: state freezes past each length, so
        # the final c is the cell state at step len[b]-1.
        active = t < lens                            # (B, 1) bool
        c = jnp.where(active, c_new, c)
        h = jnp.where(active, h_new, h)

    c_out_ref[...] = c


def text_processing_forward(question, lengths, emb_table, w_ih, w_hh, b_ih, b_hh):
    """question: (B, T) int32; lengths: (B,) int32.  Returns c: (B, H) f32."""
    B, T = question.shape
    H = w_hh.shape[1]
    I = w_ih.shape[1]

    # Gather directly into time-major (T, B, I) (only the int index matrix is
    # transposed), then flatten to (T*B, I) for the hoisted input projection.
    x_flat = jnp.take(emb_table, question.T, axis=0).astype(jnp.float32)
    x_flat = x_flat.reshape(T * B, I)

    wih_t = jnp.transpose(w_ih).astype(jnp.float32)            # (I, 4H)
    whh_t = jnp.transpose(w_hh).astype(jnp.float32)            # (H, 4H)
    bias = (b_ih + b_hh).reshape(1, -1).astype(jnp.float32)    # (1, 4H)
    lens2d = lengths.astype(jnp.int32).reshape(B, 1)

    vmem = pl.BlockSpec(memory_space=pltpu.MemorySpace.VMEM)
    return pl.pallas_call(
        lstm_kernel,
        out_shape=jax.ShapeDtypeStruct((B, H), jnp.float32),
        in_specs=[vmem, vmem, vmem, vmem, vmem],
        out_specs=vmem,
    )(x_flat, lens2d, wih_t, whh_t, bias)


def xavier_uniform(key, shape):
    fan_out, fan_in = shape[0], shape[1]
    bound = float(np.sqrt(6.0 / (fan_in + fan_out)))
    return jax.random.uniform(key, shape, jnp.float32, -bound, bound)


def reference_forward(question, lengths, emb_table, w_ih, w_hh, b_ih, b_hh):
    """Pure-JAX reference mirroring PyTorch Embedding->tanh->packed LSTM->c."""
    B, T = question.shape
    H = w_hh.shape[1]
    x = jnp.tanh(jnp.take(emb_table, question, axis=0))     # (B, T, I)

    def step(carry, t):
        h, c = carry
        x_t = x[:, t, :]
        gates = x_t @ w_ih.T + h @ w_hh.T + b_ih + b_hh
        i_g = jax.nn.sigmoid(gates[:, 0 * H:1 * H])
        f_g = jax.nn.sigmoid(gates[:, 1 * H:2 * H])
        g_g = jnp.tanh(gates[:, 2 * H:3 * H])
        o_g = jax.nn.sigmoid(gates[:, 3 * H:4 * H])
        c_new = f_g * c + i_g * g_g
        h_new = o_g * jnp.tanh(c_new)
        active = (t < lengths)[:, None]
        return (jnp.where(active, h_new, h), jnp.where(active, c_new, c)), None

    h0 = jnp.zeros((B, H), jnp.float32)
    c0 = jnp.zeros((B, H), jnp.float32)
    (_, c_fin), _ = lax.scan(step, (h0, c0), jnp.arange(T))
    return c_fin


if __name__ == "__main__":
    # Module hyper-params (small): l_dict=32 vocab, l_ques=16 embedding/input
    # size, embedding_size=32 LSTM hidden size.  dropout=None -> no dropout.
    L_DICT, L_QUES, HIDDEN = 32, 16, 32
    B, T = 2, 8

    key = jax.random.PRNGKey(0)
    k_emb, k_ih, k_hh, k_q = jax.random.split(key, 4)

    emb_table = xavier_uniform(k_emb, (L_DICT, L_QUES))            # embedding.weight
    w_ih = xavier_uniform(k_ih, (4 * HIDDEN, L_QUES))              # weight_ih_l0
    w_hh = xavier_uniform(k_hh, (4 * HIDDEN, HIDDEN))              # weight_hh_l0
    b_ih = jnp.zeros((4 * HIDDEN,), jnp.float32)                   # bias_ih_l0.zero_()
    b_hh = jnp.zeros((4 * HIDDEN,), jnp.float32)                   # bias_hh_l0.zero_()

    question = jax.random.randint(k_q, (B, T), 1, L_DICT, dtype=jnp.int32)
    lengths = jnp.array([8, 5], dtype=jnp.int32)                   # variable lengths
    # zero out the padded positions (index 0 == padding_idx)
    pad_mask = jnp.arange(T)[None, :] < lengths[:, None]
    question = jnp.where(pad_mask, question, 0)

    c_kernel = text_processing_forward(question, lengths, emb_table,
                                       w_ih, w_hh, b_ih, b_hh)
    c_kernel = jax.block_until_ready(c_kernel)

    c_ref = reference_forward(question, lengths, emb_table, w_ih, w_hh, b_ih, b_hh)
    np.testing.assert_allclose(np.asarray(c_kernel), np.asarray(c_ref),
                               rtol=1e-5, atol=1e-5)

    assert c_kernel.shape == (B, HIDDEN)
    print("KERNEL_OK")
</pallas_src>

<mosaic_0001>
module attributes {stable_mosaic.version = 11 : i64} {
  func.func @lstm_kernel(%arg0: memref<16x16xf32, #tpu.memory_space<vmem>>, %arg1: memref<2x1xi32, #tpu.memory_space<vmem>>, %arg2: memref<16x128xf32, #tpu.memory_space<vmem>>, %arg3: memref<32x128xf32, #tpu.memory_space<vmem>>, %arg4: memref<1x128xf32, #tpu.memory_space<vmem>>, %arg5: memref<2x32xf32, #tpu.memory_space<vmem>>) attributes {dimension_semantics = [], scalar_prefetch = 0 : i64, scratch_operands = 0 : i64, tpu.core_type = #tpu.core_type<tc>} {
    %c0 = arith.constant 0 : index
    %c0_0 = arith.constant 0 : index
    %0 = vector.load %arg0[%c0, %c0_0] : memref<16x16xf32, #tpu.memory_space<vmem>>, vector<16x16xf32>
    %1 = math.tanh %0 : vector<16x16xf32>
    %c0_1 = arith.constant 0 : index
    %c0_2 = arith.constant 0 : index
    %2 = vector.load %arg2[%c0_1, %c0_2] : memref<16x128xf32, #tpu.memory_space<vmem>>, vector<16x128xf32>
    %cst = arith.constant dense<0.000000e+00> : vector<16x128xf32>
    %3 = tpu.matmul %1, %2, %cst {dimension_numbers = #tpu.dot_dimension_numbers<[1], [0], [0], [1], [0, 0, 1, 1], [], []>} : vector<16x16xf32>, vector<16x128xf32>, vector<16x128xf32> -> vector<16x128xf32>
    %c0_3 = arith.constant 0 : index
    %c0_4 = arith.constant 0 : index
    %4 = vector.load %arg4[%c0_3, %c0_4] : memref<1x128xf32, #tpu.memory_space<vmem>>, vector<1x128xf32>
    %5 = vector.broadcast %4 : vector<1x128xf32> to vector<16x128xf32>
    %6 = arith.addf %3, %5 : vector<16x128xf32>
    %c0_5 = arith.constant 0 : index
    %c0_6 = arith.constant 0 : index
    %7 = vector.load %arg3[%c0_5, %c0_6] : memref<32x128xf32, #tpu.memory_space<vmem>>, vector<32x128xf32>
    %c0_7 = arith.constant 0 : index
    %c0_8 = arith.constant 0 : index
    %8 = vector.load %arg1[%c0_7, %c0_8] : memref<2x1xi32, #tpu.memory_space<vmem>>, vector<2x1xi32>
    %cst_9 = arith.constant 0.000000e+00 : f32
    %9 = vector.broadcast %cst_9 : f32 to vector<2x32xf32>
    %cst_10 = arith.constant 0.000000e+00 : f32
    %10 = vector.broadcast %cst_10 : f32 to vector<2x32xf32>
    %11 = vector.extract_strided_slice %6 {offsets = [0, 0], sizes = [2, 128], strides = [1, 1]} : vector<16x128xf32> to vector<2x128xf32>
    %cst_11 = arith.constant dense<0.000000e+00> : vector<2x128xf32>
    %12 = tpu.matmul %9, %7, %cst_11 {dimension_numbers = #tpu.dot_dimension_numbers<[1], [0], [0], [1], [0, 0, 1, 1], [], []>} : vector<2x32xf32>, vector<32x128xf32>, vector<2x128xf32> -> vector<2x128xf32>
    %13 = arith.addf %11, %12 : vector<2x128xf32>
    %14 = arith.negf %13 : vector<2x128xf32>
    %15 = math.exp %14 : vector<2x128xf32>
    %cst_12 = arith.constant 1.000000e+00 : f32
    %16 = vector.broadcast %cst_12 : f32 to vector<2x128xf32>
    %17 = arith.addf %16, %15 : vector<2x128xf32>
    %18 = arith.divf %16, %17 : vector<2x128xf32>
    %19 = math.tanh %13 : vector<2x128xf32>
    %20 = vector.extract_strided_slice %18 {offsets = [0, 0], sizes = [2, 32], strides = [1, 1]} : vector<2x128xf32> to vector<2x32xf32>
    %21 = vector.extract_strided_slice %18 {offsets = [0, 32], sizes = [2, 32], strides = [1, 1]} : vector<2x128xf32> to vector<2x32xf32>
    %22 = vector.extract_strided_slice %19 {offsets = [0, 64], sizes = [2, 32], strides = [1, 1]} : vector<2x128xf32> to vector<2x32xf32>
    %23 = vector.extract_strided_slice %18 {offsets = [0, 96], sizes = [2, 32], strides = [1, 1]} : vector<2x128xf32> to vector<2x32xf32>
    %24 = arith.mulf %21, %10 : vector<2x32xf32>
    %25 = arith.mulf %20, %22 : vector<2x32xf32>
    %26 = arith.addf %24, %25 : vector<2x32xf32>
    %27 = math.tanh %26 : vector<2x32xf32>
    %28 = arith.mulf %23, %27 : vector<2x32xf32>
    %c0_i32 = arith.constant 0 : i32
    %29 = vector.broadcast %c0_i32 : i32 to vector<2x1xi32>
    %30 = arith.cmpi sgt, %8, %29 : vector<2x1xi32>
    %31 = vector.shape_cast %30 : vector<2x1xi1> to vector<2x1xi1>
    %32 = vector.broadcast %31 : vector<2x1xi1> to vector<2x32xi1>
    %33 = arith.select %32, %26, %10 : vector<2x32xi1>, vector<2x32xf32>
    %34 = vector.shape_cast %30 : vector<2x1xi1> to vector<2x1xi1>
    %35 = vector.broadcast %34 : vector<2x1xi1> to vector<2x32xi1>
    %36 = arith.select %35, %28, %9 : vector<2x32xi1>, vector<2x32xf32>
    %37 = vector.extract_strided_slice %6 {offsets = [2, 0], sizes = [2, 128], strides = [1, 1]} : vector<16x128xf32> to vector<2x128xf32>
    %cst_13 = arith.constant dense<0.000000e+00> : vector<2x128xf32>
    %38 = tpu.matmul %36, %7, %cst_13 {dimension_numbers = #tpu.dot_dimension_numbers<[1], [0], [0], [1], [0, 0, 1, 1], [], []>} : vector<2x32xf32>, vector<32x128xf32>, vector<2x128xf32> -> vector<2x128xf32>
    %39 = arith.addf %37, %38 : vector<2x128xf32>
    %40 = arith.negf %39 : vector<2x128xf32>
    %41 = math.exp %40 : vector<2x128xf32>
    %cst_14 = arith.constant 1.000000e+00 : f32
    %42 = vector.broadcast %cst_14 : f32 to vector<2x128xf32>
    %43 = arith.addf %42, %41 : vector<2x128xf32>
    %44 = arith.divf %42, %43 : vector<2x128xf32>
    %45 = math.tanh %39 : vector<2x128xf32>
    %46 = vector.extract_strided_slice %44 {offsets = [0, 0], sizes = [2, 32], strides = [1, 1]} : vector<2x128xf32> to vector<2x32xf32>
    %47 = vector.extract_strided_slice %44 {offsets = [0, 32], sizes = [2, 32], strides = [1, 1]} : vector<2x128xf32> to vector<2x32xf32>
    %48 = vector.extract_strided_slice %45 {offsets = [0, 64], sizes = [2, 32], strides = [1, 1]} : vector<2x128xf32> to vector<2x32xf32>
    %49 = vector.extract_strided_slice %44 {offsets = [0, 96], sizes = [2, 32], strides = [1, 1]} : vector<2x128xf32> to vector<2x32xf32>
    %50 = arith.mulf %47, %33 : vector<2x32xf32>
    %51 = arith.mulf %46, %48 : vector<2x32xf32>
    %52 = arith.addf %50, %51 : vector<2x32xf32>
    %53 = math.tanh %52 : vector<2x32xf32>
    %54 = arith.mulf %49, %53 : vector<2x32xf32>
    %c1_i32 = arith.constant 1 : i32
    %55 = vector.broadcast %c1_i32 : i32 to vector<2x1xi32>
    %56 = arith.cmpi sgt, %8, %55 : vector<2x1xi32>
    %57 = vector.shape_cast %56 : vector<2x1xi1> to vector<2x1xi1>
    %58 = vector.broadcast %57 : vector<2x1xi1> to vector<2x32xi1>
    %59 = arith.select %58, %52, %33 : vector<2x32xi1>, vector<2x32xf32>
    %60 = vector.shape_cast %56 : vector<2x1xi1> to vector<2x1xi1>
    %61 = vector.broadcast %60 : vector<2x1xi1> to vector<2x32xi1>
    %62 = arith.select %61, %54, %36 : vector<2x32xi1>, vector<2x32xf32>
    %63 = vector.extract_strided_slice %6 {offsets = [4, 0], sizes = [2, 128], strides = [1, 1]} : vector<16x128xf32> to vector<2x128xf32>
    %cst_15 = arith.constant dense<0.000000e+00> : vector<2x128xf32>
    %64 = tpu.matmul %62, %7, %cst_15 {dimension_numbers = #tpu.dot_dimension_numbers<[1], [0], [0], [1], [0, 0, 1, 1], [], []>} : vector<2x32xf32>, vector<32x128xf32>, vector<2x128xf32> -> vector<2x128xf32>
    %65 = arith.addf %63, %64 : vector<2x128xf32>
    %66 = arith.negf %65 : vector<2x128xf32>
    %67 = math.exp %66 : vector<2x128xf32>
    %cst_16 = arith.constant 1.000000e+00 : f32
    %68 = vector.broadcast %cst_16 : f32 to vector<2x128xf32>
    %69 = arith.addf %68, %67 : vector<2x128xf32>
    %70 = arith.divf %68, %69 : vector<2x128xf32>
    %71 = math.tanh %65 : vector<2x128xf32>
    %72 = vector.extract_strided_slice %70 {offsets = [0, 0], sizes = [2, 32], strides = [1, 1]} : vector<2x128xf32> to vector<2x32xf32>
    %73 = vector.extract_strided_slice %70 {offsets = [0, 32], sizes = [2, 32], strides = [1, 1]} : vector<2x128xf32> to vector<2x32xf32>
    %74 = vector.extract_strided_slice %71 {offsets = [0, 64], sizes = [2, 32], strides = [1, 1]} : vector<2x128xf32> to vector<2x32xf32>
    %75 = vector.extract_strided_slice %70 {offsets = [0, 96], sizes = [2, 32], strides = [1, 1]} : vector<2x128xf32> to vector<2x32xf32>
    %76 = arith.mulf %73, %59 : vector<2x32xf32>
    %77 = arith.mulf %72, %74 : vector<2x32xf32>
    %78 = arith.addf %76, %77 : vector<2x32xf32>
    %79 = math.tanh %78 : vector<2x32xf32>
    %80 = arith.mulf %75, %79 : vector<2x32xf32>
    %c2_i32 = arith.constant 2 : i32
    %81 = vector.broadcast %c2_i32 : i32 to vector<2x1xi32>
    %82 = arith.cmpi sgt, %8, %81 : vector<2x1xi32>
    %83 = vector.shape_cast %82 : vector<2x1xi1> to vector<2x1xi1>
    %84 = vector.broadcast %83 : vector<2x1xi1> to vector<2x32xi1>
    %85 = arith.select %84, %78, %59 : vector<2x32xi1>, vector<2x32xf32>
    %86 = vector.shape_cast %82 : vector<2x1xi1> to vector<2x1xi1>
    %87 = vector.broadcast %86 : vector<2x1xi1> to vector<2x32xi1>
    %88 = arith.select %87, %80, %62 : vector<2x32xi1>, vector<2x32xf32>
    %89 = vector.extract_strided_slice %6 {offsets = [6, 0], sizes = [2, 128], strides = [1, 1]} : vector<16x128xf32> to vector<2x128xf32>
    %cst_17 = arith.constant dense<0.000000e+00> : vector<2x128xf32>
    %90 = tpu.matmul %88, %7, %cst_17 {dimension_numbers = #tpu.dot_dimension_numbers<[1], [0], [0], [1], [0, 0, 1, 1], [], []>} : vector<2x32xf32>, vector<32x128xf32>, vector<2x128xf32> -> vector<2x128xf32>
    %91 = arith.addf %89, %90 : vector<2x128xf32>
    %92 = arith.negf %91 : vector<2x128xf32>
    %93 = math.exp %92 : vector<2x128xf32>
    %cst_18 = arith.constant 1.000000e+00 : f32
    %94 = vector.broadcast %cst_18 : f32 to vector<2x128xf32>
    %95 = arith.addf %94, %93 : vector<2x128xf32>
    %96 = arith.divf %94, %95 : vector<2x128xf32>
    %97 = math.tanh %91 : vector<2x128xf32>
    %98 = vector.extract_strided_slice %96 {offsets = [0, 0], sizes = [2, 32], strides = [1, 1]} : vector<2x128xf32> to vector<2x32xf32>
    %99 = vector.extract_strided_slice %96 {offsets = [0, 32], sizes = [2, 32], strides = [1, 1]} : vector<2x128xf32> to vector<2x32xf32>
    %100 = vector.extract_strided_slice %97 {offsets = [0, 64], sizes = [2, 32], strides = [1, 1]} : vector<2x128xf32> to vector<2x32xf32>
    %101 = vector.extract_strided_slice %96 {offsets = [0, 96], sizes = [2, 32], strides = [1, 1]} : vector<2x128xf32> to vector<2x32xf32>
    %102 = arith.mulf %99, %85 : vector<2x32xf32>
    %103 = arith.mulf %98, %100 : vector<2x32xf32>
    %104 = arith.addf %102, %103 : vector<2x32xf32>
    %105 = math.tanh %104 : vector<2x32xf32>
    %106 = arith.mulf %101, %105 : vector<2x32xf32>
    %c3_i32 = arith.constant 3 : i32
    %107 = vector.broadcast %c3_i32 : i32 to vector<2x1xi32>
    %108 = arith.cmpi sgt, %8, %107 : vector<2x1xi32>
    %109 = vector.shape_cast %108 : vector<2x1xi1> to vector<2x1xi1>
    %110 = vector.broadcast %109 : vector<2x1xi1> to vector<2x32xi1>
    %111 = arith.select %110, %104, %85 : vector<2x32xi1>, vector<2x32xf32>
    %112 = vector.shape_cast %108 : vector<2x1xi1> to vector<2x1xi1>
    %113 = vector.broadcast %112 : vector<2x1xi1> to vector<2x32xi1>
    %114 = arith.select %113, %106, %88 : vector<2x32xi1>, vector<2x32xf32>
    %115 = vector.extract_strided_slice %6 {offsets = [8, 0], sizes = [2, 128], strides = [1, 1]} : vector<16x128xf32> to vector<2x128xf32>
    %cst_19 = arith.constant dense<0.000000e+00> : vector<2x128xf32>
    %116 = tpu.matmul %114, %7, %cst_19 {dimension_numbers = #tpu.dot_dimension_numbers<[1], [0], [0], [1], [0, 0, 1, 1], [], []>} : vector<2x32xf32>, vector<32x128xf32>, vector<2x128xf32> -> vector<2x128xf32>
    %117 = arith.addf %115, %116 : vector<2x128xf32>
    %118 = arith.negf %117 : vector<2x128xf32>
    %119 = math.exp %118 : vector<2x128xf32>
    %cst_20 = arith.constant 1.000000e+00 : f32
    %120 = vector.broadcast %cst_20 : f32 to vector<2x128xf32>
    %121 = arith.addf %120, %119 : vector<2x128xf32>
    %122 = arith.divf %120, %121 : vector<2x128xf32>
    %123 = math.tanh %117 : vector<2x128xf32>
    %124 = vector.extract_strided_slice %122 {offsets = [0, 0], sizes = [2, 32], strides = [1, 1]} : vector<2x128xf32> to vector<2x32xf32>
    %125 = vector.extract_strided_slice %122 {offsets = [0, 32], sizes = [2, 32], strides = [1, 1]} : vector<2x128xf32> to vector<2x32xf32>
    %126 = vector.extract_strided_slice %123 {offsets = [0, 64], sizes = [2, 32], strides = [1, 1]} : vector<2x128xf32> to vector<2x32xf32>
    %127 = vector.extract_strided_slice %122 {offsets = [0, 96], sizes = [2, 32], strides = [1, 1]} : vector<2x128xf32> to vector<2x32xf32>
    %128 = arith.mulf %125, %111 : vector<2x32xf32>
    %129 = arith.mulf %124, %126 : vector<2x32xf32>
    %130 = arith.addf %128, %129 : vector<2x32xf32>
    %131 = math.tanh %130 : vector<2x32xf32>
    %132 = arith.mulf %127, %131 : vector<2x32xf32>
    %c4_i32 = arith.constant 4 : i32
    %133 = vector.broadcast %c4_i32 : i32 to vector<2x1xi32>
    %134 = arith.cmpi sgt, %8, %133 : vector<2x1xi32>
    %135 = vector.shape_cast %134 : vector<2x1xi1> to vector<2x1xi1>
    %136 = vector.broadcast %135 : vector<2x1xi1> to vector<2x32xi1>
    %137 = arith.select %136, %130, %111 : vector<2x32xi1>, vector<2x32xf32>
    %138 = vector.shape_cast %134 : vector<2x1xi1> to vector<2x1xi1>
    %139 = vector.broadcast %138 : vector<2x1xi1> to vector<2x32xi1>
    %140 = arith.select %139, %132, %114 : vector<2x32xi1>, vector<2x32xf32>
    %141 = vector.extract_strided_slice %6 {offsets = [10, 0], sizes = [2, 128], strides = [1, 1]} : vector<16x128xf32> to vector<2x128xf32>
    %cst_21 = arith.constant dense<0.000000e+00> : vector<2x128xf32>
    %142 = tpu.matmul %140, %7, %cst_21 {dimension_numbers = #tpu.dot_dimension_numbers<[1], [0], [0], [1], [0, 0, 1, 1], [], []>} : vector<2x32xf32>, vector<32x128xf32>, vector<2x128xf32> -> vector<2x128xf32>
    %143 = arith.addf %141, %142 : vector<2x128xf32>
    %144 = arith.negf %143 : vector<2x128xf32>
    %145 = math.exp %144 : vector<2x128xf32>
    %cst_22 = arith.constant 1.000000e+00 : f32
    %146 = vector.broadcast %cst_22 : f32 to vector<2x128xf32>
    %147 = arith.addf %146, %145 : vector<2x128xf32>
    %148 = arith.divf %146, %147 : vector<2x128xf32>
    %149 = math.tanh %143 : vector<2x128xf32>
    %150 = vector.extract_strided_slice %148 {offsets = [0, 0], sizes = [2, 32], strides = [1, 1]} : vector<2x128xf32> to vector<2x32xf32>
    %151 = vector.extract_strided_slice %148 {offsets = [0, 32], sizes = [2, 32], strides = [1, 1]} : vector<2x128xf32> to vector<2x32xf32>
    %152 = vector.extract_strided_slice %149 {offsets = [0, 64], sizes = [2, 32], strides = [1, 1]} : vector<2x128xf32> to vector<2x32xf32>
    %153 = vector.extract_strided_slice %148 {offsets = [0, 96], sizes = [2, 32], strides = [1, 1]} : vector<2x128xf32> to vector<2x32xf32>
    %154 = arith.mulf %151, %137 : vector<2x32xf32>
    %155 = arith.mulf %150, %152 : vector<2x32xf32>
    %156 = arith.addf %154, %155 : vector<2x32xf32>
    %157 = math.tanh %156 : vector<2x32xf32>
    %158 = arith.mulf %153, %157 : vector<2x32xf32>
    %c5_i32 = arith.constant 5 : i32
    %159 = vector.broadcast %c5_i32 : i32 to vector<2x1xi32>
    %160 = arith.cmpi sgt, %8, %159 : vector<2x1xi32>
    %161 = vector.shape_cast %160 : vector<2x1xi1> to vector<2x1xi1>
    %162 = vector.broadcast %161 : vector<2x1xi1> to vector<2x32xi1>
    %163 = arith.select %162, %156, %137 : vector<2x32xi1>, vector<2x32xf32>
    %164 = vector.shape_cast %160 : vector<2x1xi1> to vector<2x1xi1>
    %165 = vector.broadcast %164 : vector<2x1xi1> to vector<2x32xi1>
    %166 = arith.select %165, %158, %140 : vector<2x32xi1>, vector<2x32xf32>
    %167 = vector.extract_strided_slice %6 {offsets = [12, 0], sizes = [2, 128], strides = [1, 1]} : vector<16x128xf32> to vector<2x128xf32>
    %cst_23 = arith.constant dense<0.000000e+00> : vector<2x128xf32>
    %168 = tpu.matmul %166, %7, %cst_23 {dimension_numbers = #tpu.dot_dimension_numbers<[1], [0], [0], [1], [0, 0, 1, 1], [], []>} : vector<2x32xf32>, vector<32x128xf32>, vector<2x128xf32> -> vector<2x128xf32>
    %169 = arith.addf %167, %168 : vector<2x128xf32>
    %170 = arith.negf %169 : vector<2x128xf32>
    %171 = math.exp %170 : vector<2x128xf32>
    %cst_24 = arith.constant 1.000000e+00 : f32
    %172 = vector.broadcast %cst_24 : f32 to vector<2x128xf32>
    %173 = arith.addf %172, %171 : vector<2x128xf32>
    %174 = arith.divf %172, %173 : vector<2x128xf32>
    %175 = math.tanh %169 : vector<2x128xf32>
    %176 = vector.extract_strided_slice %174 {offsets = [0, 0], sizes = [2, 32], strides = [1, 1]} : vector<2x128xf32> to vector<2x32xf32>
    %177 = vector.extract_strided_slice %174 {offsets = [0, 32], sizes = [2, 32], strides = [1, 1]} : vector<2x128xf32> to vector<2x32xf32>
    %178 = vector.extract_strided_slice %175 {offsets = [0, 64], sizes = [2, 32], strides = [1, 1]} : vector<2x128xf32> to vector<2x32xf32>
    %179 = vector.extract_strided_slice %174 {offsets = [0, 96], sizes = [2, 32], strides = [1, 1]} : vector<2x128xf32> to vector<2x32xf32>
    %180 = arith.mulf %177, %163 : vector<2x32xf32>
    %181 = arith.mulf %176, %178 : vector<2x32xf32>
    %182 = arith.addf %180, %181 : vector<2x32xf32>
    %183 = math.tanh %182 : vector<2x32xf32>
    %184 = arith.mulf %179, %183 : vector<2x32xf32>
    %c6_i32 = arith.constant 6 : i32
    %185 = vector.broadcast %c6_i32 : i32 to vector<2x1xi32>
    %186 = arith.cmpi sgt, %8, %185 : vector<2x1xi32>
    %187 = vector.shape_cast %186 : vector<2x1xi1> to vector<2x1xi1>
    %188 = vector.broadcast %187 : vector<2x1xi1> to vector<2x32xi1>
    %189 = arith.select %188, %182, %163 : vector<2x32xi1>, vector<2x32xf32>
    %190 = vector.shape_cast %186 : vector<2x1xi1> to vector<2x1xi1>
    %191 = vector.broadcast %190 : vector<2x1xi1> to vector<2x32xi1>
    %192 = arith.select %191, %184, %166 : vector<2x32xi1>, vector<2x32xf32>
    %193 = vector.extract_strided_slice %6 {offsets = [14, 0], sizes = [2, 128], strides = [1, 1]} : vector<16x128xf32> to vector<2x128xf32>
    %cst_25 = arith.constant dense<0.000000e+00> : vector<2x128xf32>
    %194 = tpu.matmul %192, %7, %cst_25 {dimension_numbers = #tpu.dot_dimension_numbers<[1], [0], [0], [1], [0, 0, 1, 1], [], []>} : vector<2x32xf32>, vector<32x128xf32>, vector<2x128xf32> -> vector<2x128xf32>
    %195 = arith.addf %193, %194 : vector<2x128xf32>
    %196 = arith.negf %195 : vector<2x128xf32>
    %197 = math.exp %196 : vector<2x128xf32>
    %cst_26 = arith.constant 1.000000e+00 : f32
    %198 = vector.broadcast %cst_26 : f32 to vector<2x128xf32>
    %199 = arith.addf %198, %197 : vector<2x128xf32>
    %200 = arith.divf %198, %199 : vector<2x128xf32>
    %201 = math.tanh %195 : vector<2x128xf32>
    %202 = vector.extract_strided_slice %200 {offsets = [0, 0], sizes = [2, 32], strides = [1, 1]} : vector<2x128xf32> to vector<2x32xf32>
    %203 = vector.extract_strided_slice %200 {offsets = [0, 32], sizes = [2, 32], strides = [1, 1]} : vector<2x128xf32> to vector<2x32xf32>
    %204 = vector.extract_strided_slice %201 {offsets = [0, 64], sizes = [2, 32], strides = [1, 1]} : vector<2x128xf32> to vector<2x32xf32>
    %205 = arith.mulf %203, %189 : vector<2x32xf32>
    %206 = arith.mulf %202, %204 : vector<2x32xf32>
    %207 = arith.addf %205, %206 : vector<2x32xf32>
    %c7_i32 = arith.constant 7 : i32
    %208 = vector.broadcast %c7_i32 : i32 to vector<2x1xi32>
    %209 = arith.cmpi sgt, %8, %208 : vector<2x1xi32>
    %210 = vector.shape_cast %209 : vector<2x1xi1> to vector<2x1xi1>
    %211 = vector.broadcast %210 : vector<2x1xi1> to vector<2x32xi1>
    %212 = arith.select %211, %207, %189 : vector<2x32xi1>, vector<2x32xf32>
    %c0_27 = arith.constant 0 : index
    %c0_28 = arith.constant 0 : index
    %213 = vector.load %arg5[%c0_27, %c0_28] : memref<2x32xf32, #tpu.memory_space<vmem>>, vector<2x32xf32>
    tpu.vector_store %arg5[%c0_27, %c0_28], %212 {strides = array<i32>} : memref<2x32xf32, #tpu.memory_space<vmem>>, vector<2x32xf32>,
    return
  }
}

</mosaic_0001>

<bundles_post_ra>
// kernel: tpu_custom_call.1
= control target key start
LH: loop header
LB: loop body
LE: loop exit
PB: predicated region body
PF: predicated region fallthrough
CT: control target
= control target key end

     0   :  { %10 = vsyncpa [#allocation3], 0  ;;  %s1777_s0 = inlined_call_operand.hbm [shape: f32[16,16], index: 0, kind: input, shape index: {}]   ;;  %s1778_s1 = inlined_call_operand.vmem [shape: s32[2,1], index: 1, kind: input, shape index: {}]   ;;  %s1779_s2 = inlined_call_operand.hbm [shape: f32[16,128], index: 2, kind: input, shape index: {}]   ;;  %s1780_s3 = inlined_call_operand.hbm [shape: f32[32,128], index: 3, kind: input, shape index: {}]   ;;  %s1781_s4 = inlined_call_operand.vmem [shape: f32[1,128], index: 4, kind: input, shape index: {}]   ;;  %s1782_s5 = inlined_call_operand.hbm [shape: f32[2,32], index: 5, kind: output, shape index: {}]  }
   0x1   :  { %11 = vsyncpa [#allocation6], 0 }
   0x2   :  { %12 = vsyncpa [#allocation4], 0  ;;  %s1524_s18 = smov [#allocation5]   ;;  %s1525_s20 = smov [#allocation2]  }
   0x3   :  { %s32_s19 = sshll.u32 %s1524_s18, 4  ;;  %s18_s21 = sshll.u32 %s1525_s20, 4  ;;  %s33_s19 = int_to_ptr.vmem [resolvable:$true] %s32_s19  ;;  %s1567_s21 = int_to_ptr.vmem [resolvable:$true] %s18_s21 }
   0x4   :  { %s1430_s24 = scalar_lea.hbm %s1779_s2, 256 }
   0x5   :  { %p1431_p0 = scmp.ne.s32.totalorder %s1779_s2, %s1430_s24  ;;  %p1434_p1 = scmp.lt.u32.totalorder %s1430_s24, %s1779_s2 }
   0x7   :  { %p1436_p2 = pnand %p1434_p1, %p1431_p0 }
   0x9   :  { %1439 = shalt.err (!%p1436_p2)
}
   0xa   :  { %s1440_s29 = scalar_lea.vmem %s33_s19, 256  ;;  %p1445_p4 = scmp.lt.s32.totalorder %s33_s19, %s33_s19 }
   0xb   :  { %p1441_p3 = scmp.ne.s32.totalorder %s33_s19, %s1440_s29  ;;  %p1446_p5 = scmp.lt.s32.totalorder %s1440_s29, %s1440_s29 }
   0xd   :  { %p1447_p6 = por %p1446_p5, %p1445_p4 }
   0xf   :  { %p1448_p7 = pnand %p1447_p6, %p1441_p3 }
  0x11   :  { %1451 = shalt.err (!%p1448_p7)
}
  0x12   :  { %s1526_s30 = smov 128   ;;  %s1527_s6 = smov 8  }
  0x13   :  { %38 = dma.hbm_to_vmem [thread:$0]  %s1779_s2, 256, %s33_s19, [#allocation6], %s1526_s30, %s1526_s30, %s1527_s6  }
  0x14   :  { %s1452_s11 = scalar_lea.hbm %s1777_s0, 256 }
  0x15   :  { %p1453_p8 = scmp.ne.s32.totalorder %s1777_s0, %s1452_s11  ;;  %p1456_p9 = scmp.lt.u32.totalorder %s1452_s11, %s1777_s0 }
  0x17   :  { %p1458_p10 = pnand %p1456_p9, %p1453_p8 }
  0x19   :  { %1461 = shalt.err (!%p1458_p10)
}
  0x1a   :  { %s1462_s16 = scalar_lea.vmem %s1567_s21, 256  ;;  %p1467_p12 = scmp.lt.s32.totalorder %s1567_s21, %s1567_s21 }
  0x1b   :  { %p1463_p11 = scmp.ne.s32.totalorder %s1567_s21, %s1462_s16  ;;  %p1468_p13 = scmp.lt.s32.totalorder %s1462_s16, %s1462_s16 }
  0x1d   :  { %p1469_p0 = por %p1468_p13, %p1467_p12 }
  0x1f   :  { %p1470_p1 = pnand %p1469_p0, %p1463_p11 }
  0x21   :  { %1473 = shalt.err (!%p1470_p1)
}
  0x22   :  { %24 = dma.hbm_to_vmem [thread:$0]  %s1777_s0, 256, %s1567_s21, [#allocation3], %s1526_s30, %s1526_s30, %s1527_s6  }
  0x23   :  { %s1528_s18 = smov [#allocation7]   ;;  %s1474_s23 = scalar_lea.hbm %s1780_s3, 512 }
  0x24   :  { %s44_s19 = sshll.u32 %s1528_s18, 4  ;;  %p1475_p2 = scmp.ne.s32.totalorder %s1780_s3, %s1474_s23  ;;  %s45_s19 = int_to_ptr.vmem [resolvable:$true] %s44_s19 }
  0x25   :  { %p1478_p3 = scmp.lt.u32.totalorder %s1474_s23, %s1780_s3 }
  0x27   :  { %p1480_p4 = pnand %p1478_p3, %p1475_p2 }
  0x29   :  { %1483 = shalt.err (!%p1480_p4)
}
  0x2a   :  { %s1484_s28 = scalar_lea.vmem %s45_s19, 512  ;;  %p1489_p6 = scmp.lt.s32.totalorder %s45_s19, %s45_s19 }
  0x2b   :  { %p1485_p5 = scmp.ne.s32.totalorder %s45_s19, %s1484_s28  ;;  %p1490_p7 = scmp.lt.s32.totalorder %s1484_s28, %s1484_s28 }
  0x2d   :  { %p1491_p8 = por %p1490_p7, %p1489_p6 }
  0x2f   :  { %p1492_p9 = pnand %p1491_p8, %p1485_p5 }
  0x31   :  { %1495 = shalt.err (!%p1492_p9)
}
  0x32   :  { %50 = dma.hbm_to_vmem [thread:$0]  %s1780_s3, 512, %s45_s19, [#allocation6], %s1526_s30, %s1526_s30, %s1527_s6  }
  0x33   :  { %1518 = dma.done.wait [#allocation3], 256  }
  0x34   :  { %1519 = vsyncadd [#allocation3], 4294967040 }
  0x35   :  { %1520 = dma.done.wait [#allocation6], 768  }
  0x36   :  { %1521 = vsyncadd [#allocation6], 4294966528  ;;  %v1529_v0 = vmov 0.0|0.0   ;;  %vm1530_vm0 = vmmov 0   ;;  %v1531_v1 = vmov 0.0   ;;  %v157_v2 = vld [vmem:[#allocation7] sm:$0xff] }
  0x37   :  { %1301 = vmatprep.subr.bf16.mxu1 %v1529_v0  ;;  %1217 = vmatprep.mubr.msk.f32.mxu1 %vm1530_vm0, %v1531_v1  ;;  %v158_v3 = vld [vmem:[#allocation7 + $0x8] sm:$0xff]  ;;  %v66_v4 = vld [vmem:[#allocation5] sm:$0xff]  ;;  %v67_v6 = vld [vmem:[#allocation5 + $0x8] sm:$0xff]  ;;  %vm75_vm1 = vcmask 130048   ;;  %v1532_v16 = vmov 0   ;;  %vm162_vm4 = vcmask 261120  }
  0x38   :  { %v1622_v5 = vpack.c.bf16 %v158_v3, %v157_v2  ;;  %v62_v7 = vld [vmem:[#allocation2] sm:$0xff]  ;;  %v159_v8 = vld [vmem:[#allocation7 + $0x10] sm:$0xff]  ;;  %v1297_v9 = vpack.c.bf16 %v67_v6, %v66_v4  ;;  %v160_v10 = vld [vmem:[#allocation7 + $0x18] sm:$0xff]  ;;  %1362 = vset.pattern.permute.xlu1 %v1532_v16  ;;  %1363 = vset.pattern.permute.xlu0 %v1532_v16  ;;  %s1535_s7 = smov 96   ;;  %s1536_s8 = smov [#allocation8]  }
  0x39   :  { %1364 = vtanh.f32 %v62_v7  ;;  %v63_v11 = vld [vmem:[#allocation2 + $0x8] sm:$0xff]  ;;  %v1625_v12 = vpack.c.bf16 %v160_v10, %v159_v8  ;;  %v1647_v15 = vld [vmem:[%s1778_s1] sm:$0x3]  ;;  %s1533_s1 = smov 64   ;;  %s1130_s9 = sshll.u32 %s1536_s8, 4  ;;  %s1131_s9 = int_to_ptr.vmem [resolvable:$true] %s1130_s9 }
  0x3a   :  { %1303 = vmatpush3.bf16.msra.mxu1 %v1622_v5  ;;  %1366 = vtanh.f32 %v63_v11  ;;  %1298 = vmatprep.subr.bf16.mxu0 %v1297_v9  ;;  %vm261_vm2 = vcmp.gt.s32.totalorder %v1647_v15, 0  ;;  %v1140_v20 = vld [vmem:[%s1781_s4] ss:$0 sm:$0xff]  ;;  %s1534_s4 = smov 32   ;;  %vm375_vm5 = vcmp.gt.s32.totalorder %v1647_v15, 1  ;;  %vm503_vm7 = vcmp.gt.s32.totalorder %v1647_v15, 2  ;;  %p1501_p11 = scmp.lt.s32.totalorder %s1131_s9, %s1131_s9 }
  0x3b   :  { %1304 = vmatprep.subr.bf16.mxu1 %v1529_v0  ;;  %1300 = vmatpush3.bf16.msra.mxu0 %v1297_v9  ;;  %v262_v17 = vsel %vm261_vm2, 1, %v1532_v16  ;;  %v376_v53 = vsel %vm375_vm5, 1, %v1532_v16  ;;  %vm627_vm9 = vcmp.gt.s32.totalorder %v1647_v15, 3  ;;  %vm747_vm11 = vcmp.gt.s32.totalorder %v1647_v15, 4  ;;  %s1496_s10 = scalar_lea.vmem %s1131_s9, 32 }
  0x3c   :  { %1307 = vmatprep.subr.bf16.mxu0 %v1529_v0  ;;  %264 = vperm.xlu1 %1362, %v262_v17   ;;  %vm864_vm13 = vcmp.gt.s32.totalorder %v1647_v15, 5  ;;  %vm992_vm15 = vcmp.gt.s32.totalorder %v1647_v15, 6  ;;  %vm1122_vm2 = vcmask 254976   ;;  %p1497_p10 = scmp.ne.s32.totalorder %s1131_s9, %s1496_s10  ;;  %p1502_p12 = scmp.lt.s32.totalorder %s1496_s10, %s1496_s10 }
  0x3e   :  { %1306 = vmatpush3.bf16.msra.mxu1 %v1625_v12  ;;  %p1503_p13 = por %p1502_p12, %p1501_p11 }
  0x3f   :  { %1313 = vmatprep.subr.bf16.mxu1 %v1529_v0 }
  0x40   :  { %p1504_p0 = pnand %p1503_p13, %p1497_p10 }
  0x41   :  { %1218 = vmatmul.mubr.f32.vlgmr.msra.gmra.mrb[0].mxu1 %v1531_v1 }
  0x42   :  { %1315 = vmatpush3.bf16.msra.mxu1 %v1622_v5  ;;  %1239 = vmatprep.mubr.msk.f32.mxu1 %vm1530_vm0, %v1531_v1 }
  0x43   :  { %v1365_v13 = vpop.eup %1364  ;;  %1316 = vmatprep.subr.bf16.mxu1 %v1529_v0 }
  0x44   :  { %v1367_v14 = vpop.eup %1366  ;;  %1206 = vmatprep.mubr.msk.f32.mxu0 %vm75_vm1, %v1365_v13 }
  0x45   :  { %1207 = vmatmul.mubr.msk.f32.vlgmr.msra.gmra.mrb[0].mxu0 %vm75_vm1, %v1367_v14  ;;  %vm1110_vm1 = vcmp.gt.s32.totalorder %v1647_v15, 7 }
  0x46   :  { %1309 = vmatpush3.bf16.msra.mxu0 %v1622_v5  ;;  %1228 = vmatprep.mubr.msk.f32.mxu0 %vm1530_vm0, %v1531_v1 }
  0x47   :  { %1310 = vmatprep.subr.bf16.mxu0 %v1529_v0  ;;  %1318 = vmatpush3.bf16.msra.mxu1 %v1625_v12 }
  0x48   :  { %1325 = vmatprep.subr.bf16.mxu1 %v1529_v0 }
  0x4a   :  { %1312 = vmatpush3.bf16.msra.mxu0 %v1625_v12 }
  0x4b   :  { %1319 = vmatprep.subr.bf16.mxu0 %v1529_v0 }
  0xbb   :  { %v265_v37 = vpop.permute.xlu1 %264 }
  0xbc   :  { %vm266_vm3 = vcmp.eq.s32.totalorder %v265_v37, 1 }
 0x114   :  { %v232_v18 = vpop.f32.mrb[0].mxu1 }
 0x115   :  { %v1219_v19 = vpop.f32.mrb[1].mxu1 }
 0x118   :  { %v1208_v21 = vpop.f32.mrb[0].mxu0 }
 0x119   :  { %v1656_v22 = vadd.f32 %v1208_v21, %v1140_v20  ;;  %v148_v23 = vpop.f32.mrb[1].mxu0 }
 0x11a   :  { %v1658_v24 = vadd.f32 %v1140_v20, %v148_v23 }
 0x11c   :  { %v236_v25 = vadd.f32 %v232_v18, %v1658_v24 }
 0x11e   :  { %1368 = vtanh.f32 %v236_v25  ;;  %v1143_v27 = vmul.f32 -1.442695, %v236_v25 }
 0x120   :  { %1370 = vpow2.f32 %v1143_v27 }
 0x128   :  { %v1369_v26 = vpop.eup %1368 }
 0x129   :  { %246 = vrot.lane.b32.xlu0 %v1369_v26, %s1533_s1  ;;  %v504_v26 = vsel %vm503_vm7, 1, %v1532_v16 }
 0x12a   :  { %v1371_v28 = vpop.eup %1370 }
 0x12b   :  { %v240_v29 = vadd.f32 1.0, %v1371_v28 }
 0x12d   :  { %1372 = vrcp.f32 %v240_v29 }
 0x137   :  { %v1373_v30 = vpop.eup %1372 }
 0x138   :  { %v244_v33 = vmul.f32 0.0, %v1373_v30 }
 0x19b   :  { %v247_v31 = vpop.permute.xlu0 %246 }
 0x19c   :  { %v249_v32 = vmul.f32 %v1373_v30, %v247_v31 }
 0x19e   :  { %251 = vrot.lane.b32.xlu0 %v249_v32, %s1534_s4 }
 0x210   :  { %v252_v34 = vpop.permute.xlu0 %251 }
 0x211   :  { %v254_v35 = vadd.f32 %v252_v34, %v244_v33 }
 0x213   :  { %1374 = vtanh.f32 %v254_v35  ;;  %v267_v54 = vsel %vm266_vm3, %v254_v35, 0.0 }
 0x214   :  { %v356_v55 = vrot.slane %v267_v54, 6 }
 0x21d   :  { %v1375_v36 = vpop.eup %1374 }
 0x21e   :  { %257 = vrot.lane.b32.xlu1 %v1375_v36, %s1533_s1 }
 0x290   :  { %v258_v38 = vpop.permute.xlu1 %257 }
 0x291   :  { %v260_v39 = vmul.f32 %v1373_v30, %v258_v38 }
 0x293   :  { %v268_v40 = vsel %vm266_vm3, %v260_v39, 0.0 }
 0x294   :  { %270 = vrot.lane.b32.xlu0 %v268_v40, %s1534_s4 }
 0x306   :  { %v271_v41 = vpop.permute.xlu0 %270 }
 0x307   :  { %1229 = vmatmul.mubr.msk.f32.vlgmr.msra.gmra.mrb[2].mxu0 %vm162_vm4, %v271_v41 }
 0x308   :  { %1321 = vmatpush3.bf16.msra.mxu0 %v1622_v5  ;;  %1250 = vmatprep.mubr.msk.f32.mxu0 %vm1530_vm0, %v1531_v1 }
 0x309   :  { %1322 = vmatprep.subr.bf16.mxu0 %v1529_v0 }
 0x30c   :  { %1324 = vmatpush3.bf16.msra.mxu0 %v1625_v12 }
 0x30d   :  { %1331 = vmatprep.subr.bf16.mxu0 %v1529_v0 }
 0x3da   :  { %v340_v42 = vpop.f32.mrb[2].mxu0 }
 0x3db   :  { %v345_v43 = vrot.slane %v340_v42, 6  ;;  %v1230_v44 = vpop.f32.mrb[3].mxu0 }
 0x3dd   :  { %v347_v45 = vadd.f32 %v345_v43, %v1658_v24 }
 0x3df   :  { %1376 = vtanh.f32 %v347_v45  ;;  %v1145_v47 = vmul.f32 -1.442695, %v347_v45 }
 0x3e1   :  { %1378 = vpow2.f32 %v1145_v47 }
 0x3e9   :  { %v1377_v46 = vpop.eup %1376 }
 0x3ea   :  { %360 = vrot.lane.b32.xlu1 %v1377_v46, %s1533_s1 }
 0x3eb   :  { %v1379_v48 = vpop.eup %1378 }
 0x3ec   :  { %v351_v49 = vadd.f32 1.0, %v1379_v48 }
 0x3ee   :  { %1380 = vrcp.f32 %v351_v49 }
 0x3f8   :  { %v1381_v50 = vpop.eup %1380 }
 0x3f9   :  { %v358_v56 = vmul.f32 %v1381_v50, %v356_v55 }
 0x45c   :  { %v361_v51 = vpop.permute.xlu1 %360 }
 0x45d   :  { %v363_v52 = vmul.f32 %v1381_v50, %v361_v51 }
 0x45f   :  { %365 = vrot.lane.b32.xlu0 %v363_v52, %s1534_s4 }
 0x463   :  { %378 = vperm.xlu0 %1363, %v376_v53   ;;  %v628_v53 = vsel %vm627_vm9, 1, %v1532_v16 }
 0x467   :  { %386 = vrot.lane.b32.xlu0 %v267_v54, %s1535_s7 }
 0x4d1   :  { %v366_v57 = vpop.permute.xlu0 %365 }
 0x4d2   :  { %v368_v58 = vadd.f32 %v366_v57, %v358_v56 }
 0x4d4   :  { %1382 = vtanh.f32 %v368_v58  ;;  %v382_v63 = vrot.slane %v368_v58, 2 }
 0x4de   :  { %v1383_v59 = vpop.eup %1382 }
 0x4df   :  { %371 = vrot.lane.b32.xlu1 %v1383_v59, %s1533_s1 }
 0x4e2   :  { %v379_v2 = vpop.permute.xlu0 %378 }
 0x4e3   :  { %vm380_vm6 = vcmp.eq.s32.totalorder %v379_v2, 1 }
 0x4e6   :  { %v387_v6 = vpop.permute.xlu0 %386 }
 0x551   :  { %v372_v60 = vpop.permute.xlu1 %371 }
 0x552   :  { %v374_v61 = vmul.f32 %v1381_v50, %v372_v60 }
 0x554   :  { %v391_v62 = vrot.slane %v374_v61, 2 }
 0x556   :  { %392 = vrot.lane.b32.xlu1 %v391_v62, %s1534_s4  ;;  %v748_v62 = vsel %vm747_vm11, 1, %v1532_v16 }
 0x55a   :  { %383 = vrot.lane.b32.xlu1 %v382_v63, %s1535_s7 }
 0x5c8   :  { %v393_v3 = vpop.permute.xlu1 %392 }
 0x5c9   :  { %v396_v4 = vsel %vm380_vm6, %v393_v3, %v271_v41 }
 0x5ca   :  { %1240 = vmatmul.mubr.msk.f32.vlgmr.msra.gmra.mrb[2].mxu1 %vm162_vm4, %v396_v4 }
 0x5cb   :  { %1327 = vmatpush3.bf16.msra.mxu1 %v1622_v5  ;;  %1261 = vmatprep.mubr.msk.f32.mxu1 %vm1530_vm0, %v1531_v1 }
 0x5cc   :  { %v384_v7 = vpop.permute.xlu1 %383  ;;  %1328 = vmatprep.subr.bf16.mxu1 %v1529_v0 }
 0x5cd   :  { %v389_v8 = vsel %vm380_vm6, %v384_v7, %v387_v6 }
 0x5ce   :  { %v482_v9 = vrot.slane %v389_v8, 4 }
 0x5cf   :  { %1330 = vmatpush3.bf16.msra.mxu1 %v1625_v12 }
 0x5d0   :  { %483 = vrot.lane.b32.xlu0 %v482_v9, %s1534_s4  ;;  %1337 = vmatprep.subr.bf16.mxu1 %v1529_v0 }
 0x642   :  { %v484_v27 = vpop.permute.xlu0 %483 }
 0x69d   :  { %v466_v10 = vpop.f32.mrb[2].mxu1 }
 0x69e   :  { %v471_v11 = vrot.slane %v466_v10, 4  ;;  %v1241_v13 = vpop.f32.mrb[3].mxu1 }
 0x6a0   :  { %v473_v14 = vadd.f32 %v471_v11, %v1658_v24 }
 0x6a2   :  { %1384 = vtanh.f32 %v473_v14  ;;  %v1147_v18 = vmul.f32 -1.442695, %v473_v14 }
 0x6a4   :  { %1386 = vpow2.f32 %v1147_v18 }
 0x6ac   :  { %v1385_v17 = vpop.eup %1384 }
 0x6ad   :  { %488 = vrot.lane.b32.xlu1 %v1385_v17, %s1533_s1 }
 0x6ae   :  { %v1387_v19 = vpop.eup %1386 }
 0x6af   :  { %v477_v20 = vadd.f32 1.0, %v1387_v19 }
 0x6b1   :  { %1388 = vrcp.f32 %v477_v20 }
 0x6bb   :  { %v1389_v21 = vpop.eup %1388 }
 0x6bc   :  { %v486_v28 = vmul.f32 %v1389_v21, %v484_v27 }
 0x71f   :  { %v489_v23 = vpop.permute.xlu1 %488 }
 0x720   :  { %v491_v25 = vmul.f32 %v1389_v21, %v489_v23 }
 0x722   :  { %493 = vrot.lane.b32.xlu1 %v491_v25, %s1534_s4 }
 0x726   :  { %506 = vperm.xlu1 %1362, %v504_v26  }
 0x794   :  { %v494_v29 = vpop.permute.xlu1 %493 }
 0x795   :  { %v496_v30 = vadd.f32 %v494_v29, %v486_v28 }
 0x797   :  { %1390 = vtanh.f32 %v496_v30  ;;  %v510_v31 = vrot.slane %v496_v30, 4 }
 0x799   :  { %511 = vrot.lane.b32.xlu1 %v510_v31, %s1535_s7 }
 0x7a1   :  { %v1391_v32 = vpop.eup %1390 }
 0x7a2   :  { %499 = vrot.lane.b32.xlu0 %v1391_v32, %s1533_s1 }
 0x7a5   :  { %v507_v33 = vpop.permute.xlu1 %506 }
 0x7a6   :  { %vm508_vm8 = vcmp.eq.s32.totalorder %v507_v33, 1 }
 0x80b   :  { %v512_v34 = vpop.permute.xlu1 %511 }
 0x80c   :  { %v514_v35 = vsel %vm508_vm8, %v512_v34, %v389_v8 }
 0x80d   :  { %v606_v36 = vrot.slane %v514_v35, 2 }
 0x80f   :  { %607 = vrot.lane.b32.xlu1 %v606_v36, %s1534_s4 }
 0x814   :  { %v500_v37 = vpop.permute.xlu0 %499 }
 0x815   :  { %v502_v38 = vmul.f32 %v1389_v21, %v500_v37 }
 0x817   :  { %v516_v39 = vrot.slane %v502_v38, 4 }
 0x819   :  { %517 = vrot.lane.b32.xlu0 %v516_v39, %s1534_s4 }
 0x88b   :  { %v518_v40 = vpop.permute.xlu0 %517 }
 0x88c   :  { %v520_v41 = vsel %vm508_vm8, %v518_v40, %v396_v4 }
 0x88d   :  { %1251 = vmatmul.mubr.msk.f32.vlgmr.msra.gmra.mrb[4].mxu0 %vm162_vm4, %v520_v41 }
 0x88e   :  { %1333 = vmatpush3.bf16.msra.mxu0 %v1622_v5  ;;  %1272 = vmatprep.mubr.msk.f32.mxu0 %vm1530_vm0, %v1531_v1 }
 0x88f   :  { %1334 = vmatprep.subr.bf16.mxu0 %v1529_v0 }
 0x892   :  { %1336 = vmatpush3.bf16.msra.mxu0 %v1625_v12 }
 0x893   :  { %1343 = vmatprep.subr.bf16.mxu0 %v1529_v0 }
 0x960   :  { %v590_v42 = vpop.f32.mrb[4].mxu0 }
 0x961   :  { %v595_v43 = vrot.slane %v590_v42, 2  ;;  %v1252_v44 = vpop.f32.mrb[5].mxu0 }
 0x963   :  { %v597_v45 = vadd.f32 %v595_v43, %v1658_v24  ;;  %v608_v24 = vpop.permute.xlu1 %607 }
 0x965   :  { %1392 = vtanh.f32 %v597_v45  ;;  %v1149_v47 = vmul.f32 -1.442695, %v597_v45 }
 0x967   :  { %1394 = vpow2.f32 %v1149_v47 }
 0x96f   :  { %v1393_v46 = vpop.eup %1392 }
 0x970   :  { %612 = vrot.lane.b32.xlu0 %v1393_v46, %s1533_s1 }
 0x971   :  { %v1395_v48 = vpop.eup %1394 }
 0x972   :  { %v601_v49 = vadd.f32 1.0, %v1395_v48 }
 0x974   :  { %1396 = vrcp.f32 %v601_v49 }
 0x97e   :  { %v1397_v50 = vpop.eup %1396 }
 0x97f   :  { %v610_v54 = vmul.f32 %v1397_v50, %v608_v24 }
 0x9e2   :  { %v613_v51 = vpop.permute.xlu0 %612 }
 0x9e3   :  { %v615_v52 = vmul.f32 %v1397_v50, %v613_v51 }
 0x9e5   :  { %617 = vrot.lane.b32.xlu0 %v615_v52, %s1534_s4 }
 0x9e9   :  { %630 = vperm.xlu0 %1363, %v628_v53  }
 0xa57   :  { %v618_v55 = vpop.permute.xlu0 %617 }
 0xa58   :  { %v620_v56 = vadd.f32 %v618_v55, %v610_v54 }
 0xa5a   :  { %1398 = vtanh.f32 %v620_v56  ;;  %v634_v57 = vrot.slane %v620_v56, 6 }
 0xa5c   :  { %635 = vrot.lane.b32.xlu0 %v634_v57, %s1535_s7 }
 0xa64   :  { %v1399_v58 = vpop.eup %1398 }
 0xa65   :  { %623 = vrot.lane.b32.xlu1 %v1399_v58, %s1533_s1 }
 0xa68   :  { %v631_v59 = vpop.permute.xlu0 %630 }
 0xa69   :  { %vm632_vm10 = vcmp.eq.s32.totalorder %v631_v59, 1 }
 0xace   :  { %v636_v60 = vpop.permute.xlu0 %635 }
 0xacf   :  { %v638_v61 = vsel %vm632_vm10, %v636_v60, %v514_v35 }
 0xad0   :  { %727 = vrot.lane.b32.xlu0 %v638_v61, %s1534_s4 }
 0xad4   :  { %750 = vperm.xlu0 %1363, %v748_v62  }
 0xad7   :  { %v624_v63 = vpop.permute.xlu1 %623 }
 0xad8   :  { %v626_v2 = vmul.f32 %v1397_v50, %v624_v63 }
 0xada   :  { %v640_v3 = vrot.slane %v626_v2, 6 }
 0xadc   :  { %641 = vrot.lane.b32.xlu1 %v640_v3, %s1534_s4 }
 0xb42   :  { %v728_v20 = vpop.permute.xlu0 %727 }
 0xb4e   :  { %v642_v4 = vpop.permute.xlu1 %641 }
 0xb4f   :  { %v644_v6 = vsel %vm632_vm10, %v642_v4, %v520_v41 }
 0xb50   :  { %754 = vrot.lane.b32.xlu0 %v644_v6, %s1535_s7  ;;  %1262 = vmatmul.mubr.msk.f32.vlgmr.msra.gmra.mrb[4].mxu1 %vm162_vm4, %v644_v6 }
 0xb51   :  { %1339 = vmatpush3.bf16.msra.mxu1 %v1622_v5  ;;  %1283 = vmatprep.mubr.msk.f32.mxu1 %vm1530_vm0, %v1531_v1 }
 0xb52   :  { %1340 = vmatprep.subr.bf16.mxu1 %v1529_v0 }
 0xb53   :  { %v751_v27 = vpop.permute.xlu0 %750 }
 0xb54   :  { %vm752_vm12 = vcmp.eq.s32.totalorder %v751_v27, 1 }
 0xb55   :  { %1342 = vmatpush3.bf16.msra.mxu1 %v1625_v12 }
 0xbc2   :  { %v755_v30 = vpop.permute.xlu0 %754 }
 0xc23   :  { %v714_v7 = vpop.f32.mrb[4].mxu1 }
 0xc24   :  { %v718_v8 = vadd.f32 %v714_v7, %v1656_v22  ;;  %v1263_v9 = vpop.f32.mrb[5].mxu1  ;;  %v993_v7 = vsel %vm992_vm15, 1, %v1532_v16 }
 0xc26   :  { %1400 = vtanh.f32 %v718_v8  ;;  %v1151_v11 = vmul.f32 -1.442695, %v718_v8 }
 0xc28   :  { %1402 = vpow2.f32 %v1151_v11 }
 0xc30   :  { %v1401_v10 = vpop.eup %1400 }
 0xc31   :  { %732 = vrot.lane.b32.xlu1 %v1401_v10, %s1533_s1 }
 0xc32   :  { %v1403_v13 = vpop.eup %1402 }
 0xc33   :  { %v722_v14 = vadd.f32 1.0, %v1403_v13 }
 0xc35   :  { %1404 = vrcp.f32 %v722_v14 }
 0xc3f   :  { %v1405_v17 = vpop.eup %1404 }
 0xc40   :  { %v730_v21 = vmul.f32 %v1405_v17, %v728_v20 }
 0xca3   :  { %v733_v18 = vpop.permute.xlu1 %732 }
 0xca4   :  { %v735_v19 = vmul.f32 %v1405_v17, %v733_v18 }
 0xca6   :  { %737 = vrot.lane.b32.xlu1 %v735_v19, %s1534_s4 }
 0xd18   :  { %v738_v23 = vpop.permute.xlu1 %737 }
 0xd19   :  { %v740_v25 = vadd.f32 %v738_v23, %v730_v21  ;;  %v1111_v21 = vsel %vm1110_vm1, 1, %v1532_v16 }
 0xd1b   :  { %1406 = vtanh.f32 %v740_v25 }
 0xd25   :  { %v1407_v26 = vpop.eup %1406 }
 0xd26   :  { %743 = vrot.lane.b32.xlu1 %v1407_v26, %s1533_s1 }
 0xd98   :  { %v744_v28 = vpop.permute.xlu1 %743 }
 0xd99   :  { %v746_v29 = vmul.f32 %v1405_v17, %v744_v28 }
 0xd9b   :  { %v757_v31 = vsel %vm752_vm12, %v746_v29, %v755_v30 }
 0xd9c   :  { %759 = vrot.lane.b32.xlu1 %v757_v31, %s1534_s4 }
 0xe0e   :  { %v760_v32 = vpop.permute.xlu1 %759 }
 0xe0f   :  { %1273 = vmatmul.mubr.msk.f32.vlgmr.msra.gmra.mrb[6].mxu0 %vm162_vm4, %v760_v32 }
 0xe10   :  { %1345 = vmatpush3.bf16.msra.mxu0 %v1622_v5  ;;  %1294 = vmatprep.mubr.msk.f32.mxu0 %vm1530_vm0, %v1531_v1 }
 0xe11   :  { %1346 = vmatprep.subr.bf16.mxu0 %v1529_v0  ;;  %v865_v0 = vsel %vm864_vm13, 1, %v1532_v16 }
 0xe14   :  { %1348 = vmatpush3.bf16.msra.mxu0 %v1625_v12  ;;  %v753_v12 = vsel %vm752_vm12, %v740_v25, %v728_v20 }
 0xe15   :  { %v845_v42 = vrot.slane %v753_v12, 6 }
 0xee2   :  { %v829_v33 = vpop.f32.mrb[6].mxu0 }
 0xee3   :  { %v834_v34 = vrot.slane %v829_v33, 6  ;;  %v1274_v35 = vpop.f32.mrb[7].mxu0 }
 0xee5   :  { %v836_v36 = vadd.f32 %v834_v34, %v1656_v22 }
 0xee7   :  { %1408 = vtanh.f32 %v836_v36  ;;  %v1153_v38 = vmul.f32 -1.442695, %v836_v36 }
 0xee9   :  { %1410 = vpow2.f32 %v1153_v38 }
 0xef1   :  { %v1409_v37 = vpop.eup %1408 }
 0xef2   :  { %849 = vrot.lane.b32.xlu0 %v1409_v37, %s1533_s1 }
 0xef3   :  { %v1411_v39 = vpop.eup %1410 }
 0xef4   :  { %v840_v5 = vadd.f32 1.0, %v1411_v39 }
 0xef6   :  { %1412 = vrcp.f32 %v840_v5 }
 0xf00   :  { %v1413_v40 = vpop.eup %1412 }
 0xf01   :  { %v847_v43 = vmul.f32 %v1413_v40, %v845_v42 }
 0xf64   :  { %v850_v1 = vpop.permute.xlu0 %849 }
 0xf65   :  { %v852_v41 = vmul.f32 %v1413_v40, %v850_v1 }
 0xf67   :  { %854 = vrot.lane.b32.xlu1 %v852_v41, %s1534_s4 }
 0xf6b   :  { %867 = vperm.xlu1 %1362, %v865_v0  }
 0xfd9   :  { %v855_v44 = vpop.permute.xlu1 %854 }
 0xfda   :  { %v857_v45 = vadd.f32 %v855_v44, %v847_v43 }
 0xfdc   :  { %1414 = vtanh.f32 %v857_v45  ;;  %v871_v46 = vrot.slane %v857_v45, 2 }
 0xfde   :  { %872 = vrot.lane.b32.xlu1 %v871_v46, %s1535_s7 }
 0xfe6   :  { %v1415_v47 = vpop.eup %1414 }
 0xfe7   :  { %860 = vrot.lane.b32.xlu0 %v1415_v47, %s1533_s1 }
 0xfea   :  { %v868_v51 = vpop.permute.xlu1 %867 }
 0xfeb   :  { %vm869_vm14 = vcmp.eq.s32.totalorder %v868_v51, 1 }
0x1050   :  { %v873_v24 = vpop.permute.xlu1 %872 }
0x1059   :  { %v861_v48 = vpop.permute.xlu0 %860 }
0x105a   :  { %v863_v49 = vmul.f32 %v1413_v40, %v861_v48 }
0x105c   :  { %v880_v50 = vrot.slane %v863_v49, 2 }
0x105e   :  { %881 = vrot.lane.b32.xlu0 %v880_v50, %s1534_s4 }
0x1062   :  { %875 = vrot.lane.b32.xlu0 %v753_v12, %s1535_s7 }
0x10d0   :  { %v882_v52 = vpop.permute.xlu0 %881 }
0x10d1   :  { %v885_v53 = vsel %vm869_vm14, %v882_v52, %v760_v32 }
0x10d2   :  { %1284 = vmatmul.mubr.msk.f32.vlgmr.msra.gmra.mrb[6].mxu1 %vm162_vm4, %v885_v53 }
0x10d4   :  { %v876_v54 = vpop.permute.xlu0 %875 }
0x10d5   :  { %v878_v55 = vsel %vm869_vm14, %v873_v24, %v876_v54 }
0x10d6   :  { %v971_v56 = vrot.slane %v878_v55, 4 }
0x10d8   :  { %972 = vrot.lane.b32.xlu0 %v971_v56, %s1534_s4 }
0x114a   :  { %v973_v8 = vpop.permute.xlu0 %972 }
0x11a5   :  { %v955_v57 = vpop.f32.mrb[6].mxu1 }
0x11a6   :  { %v960_v58 = vrot.slane %v955_v57, 4  ;;  %v1285_v59 = vpop.f32.mrb[7].mxu1 }
0x11a8   :  { %v962_v60 = vadd.f32 %v960_v58, %v1656_v22 }
0x11aa   :  { %1416 = vtanh.f32 %v962_v60  ;;  %v1155_v62 = vmul.f32 -1.442695, %v962_v60 }
0x11ac   :  { %1418 = vpow2.f32 %v1155_v62 }
0x11b4   :  { %v1417_v61 = vpop.eup %1416 }
0x11b5   :  { %977 = vrot.lane.b32.xlu1 %v1417_v61, %s1533_s1 }
0x11b6   :  { %v1419_v63 = vpop.eup %1418 }
0x11b7   :  { %v966_v2 = vadd.f32 1.0, %v1419_v63 }
0x11b9   :  { %1420 = vrcp.f32 %v966_v2 }
0x11c3   :  { %v1421_v3 = vpop.eup %1420 }
0x11c4   :  { %v975_v9 = vmul.f32 %v1421_v3, %v973_v8 }
0x1227   :  { %v978_v4 = vpop.permute.xlu1 %977 }
0x1228   :  { %v980_v6 = vmul.f32 %v1421_v3, %v978_v4 }
0x122a   :  { %982 = vrot.lane.b32.xlu1 %v980_v6, %s1534_s4 }
0x122e   :  { %995 = vperm.xlu1 %1362, %v993_v7  }
0x129c   :  { %v983_v10 = vpop.permute.xlu1 %982 }
0x129d   :  { %v985_v11 = vadd.f32 %v983_v10, %v975_v9 }
0x129f   :  { %1422 = vtanh.f32 %v985_v11  ;;  %v999_v13 = vrot.slane %v985_v11, 4 }
0x12a1   :  { %1000 = vrot.lane.b32.xlu1 %v999_v13, %s1535_s7 }
0x12a9   :  { %v1423_v14 = vpop.eup %1422 }
0x12aa   :  { %988 = vrot.lane.b32.xlu0 %v1423_v14, %s1533_s1 }
0x12ad   :  { %v996_v17 = vpop.permute.xlu1 %995 }
0x12ae   :  { %vm997_vm0 = vcmp.eq.s32.totalorder %v996_v17, 1 }
0x1313   :  { %v1001_v18 = vpop.permute.xlu1 %1000 }
0x1314   :  { %v1003_v19 = vsel %vm997_vm0, %v1001_v18, %v878_v55 }
0x1315   :  { %v1095_v20 = vrot.slane %v1003_v19, 2 }
0x1317   :  { %1096 = vrot.lane.b32.xlu1 %v1095_v20, %s1534_s4 }
0x131b   :  { %1113 = vperm.xlu1 %1362, %v1111_v21  }
0x131c   :  { %v989_v23 = vpop.permute.xlu0 %988 }
0x131d   :  { %v991_v25 = vmul.f32 %v1421_v3, %v989_v23 }
0x131f   :  { %v1005_v26 = vrot.slane %v991_v25, 4 }
0x1321   :  { %1006 = vrot.lane.b32.xlu0 %v1005_v26, %s1534_s4 }
0x1389   :  { %v1097_v38 = vpop.permute.xlu1 %1096 }
0x1393   :  { %v1007_v27 = vpop.permute.xlu0 %1006 }
0x1394   :  { %v1009_v28 = vsel %vm997_vm0, %v1007_v27, %v885_v53 }
0x1395   :  { %1295 = vmatmul.mubr.msk.f32.vlgmr.msra.gmra.mrb[8].mxu0 %vm162_vm4, %v1009_v28 }
0x1468   :  { %v1079_v29 = vpop.f32.mrb[8].mxu0 }
0x1469   :  { %v1084_v30 = vrot.slane %v1079_v29, 2  ;;  %v1296_v31 = vpop.f32.mrb[9].mxu0 }
0x146b   :  { %v1086_v32 = vadd.f32 %v1084_v30, %v1656_v22  ;;  %v1114_v22 = vpop.permute.xlu1 %1113 }
0x146c   :  { %vm1115_vm3 = vcmp.eq.s32.totalorder %v1114_v22, 1 }
0x146d   :  { %1424 = vtanh.f32 %v1086_v32  ;;  %v1157_v16 = vmul.f32 -1.442695, %v1086_v32 }
0x146f   :  { %1426 = vpow2.f32 %v1157_v16 }
0x1477   :  { %v1425_v15 = vpop.eup %1424 }
0x1478   :  { %1101 = vrot.lane.b32.xlu0 %v1425_v15, %s1533_s1 }
0x1479   :  { %v1427_v33 = vpop.eup %1426 }
0x147a   :  { %v1090_v34 = vadd.f32 1.0, %v1427_v33 }
0x147c   :  { %1428 = vrcp.f32 %v1090_v34 }
0x1486   :  { %v1429_v35 = vpop.eup %1428 }
0x1487   :  { %v1099_v39 = vmul.f32 %v1429_v35, %v1097_v38 }
0x14ea   :  { %v1102_v36 = vpop.permute.xlu0 %1101 }
0x14eb   :  { %v1104_v37 = vmul.f32 %v1429_v35, %v1102_v36 }
0x14ed   :  { %1106 = vrot.lane.b32.xlu0 %v1104_v37, %s1534_s4 }
0x155f   :  { %v1107_v5 = vpop.permute.xlu0 %1106 }
0x1560   :  { %v1109_v40 = vadd.f32 %v1107_v5, %v1099_v39 }
0x1562   :  { %v1117_v1 = vrot.slane %v1109_v40, 6 }
0x1564   :  { %1118 = vrot.lane.b32.xlu0 %v1117_v1, %s1535_s7 }
0x15d6   :  { %v1119_v41 = vpop.permute.xlu0 %1118 }
0x15d7   :  { %v1121_v0 = vsel %vm1115_vm3, %v1119_v41, %v1003_v19 }
0x15d8   :  { %1123 = vst.msk [vmem:[#allocation8] sm:$0x3] %vm1122_vm2, %v1121_v0 }
0x15d9   :  { %1507 = shalt.err (!%p1504_p0)
}
0x15da   :  { %s1508_s13 = scalar_lea.hbm %s1782_s5, 32 }
0x15db   :  { %p1509_p1 = scmp.ne.s32.totalorder %s1782_s5, %s1508_s13  ;;  %p1512_p2 = scmp.lt.u32.totalorder %s1508_s13, %s1782_s5 }
0x15dd   :  { %p1514_p3 = pnand %p1512_p2, %p1509_p1 }
0x15df   :  { %1517 = shalt.err (!%p1514_p3)
}
0x15e0   :  { %1133 = dma.vmem_to_hbm [thread:$0]  %s1131_s9, 32, %s1782_s5, [#allocation4]  }
0x15e1   :  { %1522 = dma.done.wait [#allocation4], 32  }
0x15e2   :  { %1523 = vsyncadd [#allocation4], 4294967264 }
0x15e3   :  { %1137 = vsyncpa [#allocation3], 1 }
0x15e4   :  { %1138 = vsyncpa [#allocation6], 1 }
0x15e5   :  { %1139 = vsyncpa [#allocation4], 1 }

</bundles_post_ra>
